<compile_context>
chip_gen: v7x
topology: tpu7x:2x2x1
jax: 0.10.0
libtpu: 0.0.40
codegen_flags: <defaults>
</compile_context>

<pallas_src>
import jax
import jax.numpy as jnp
import numpy as np
from jax import lax
from jax.experimental import pallas as pl
from jax.experimental.pallas import tpu as pltpu


def _cdiv(a, b):
    return -(-a // b)


def _device_tpu_config():
    """Returns (tensorcores_per_device, per-core VMEM footprint budget bytes)."""
    kind = ""
    try:
        kind = jax.devices()[0].device_kind.lower()
    except Exception:
        pass
    if "v5e" in kind or "v5 lite" in kind or "v5lite" in kind:
        return 1, 10 << 20              # 16 MiB scoped-VMEM default
    if "v6" in kind:
        return 1, 24 << 20              # 32 MiB scoped default, 128 MiB physical
    if "v7" in kind or "tpu7" in kind:
        return 2, 26 << 20              # 2 TCs/chip, 64 MiB VMEM per TC
    if "v4" in kind or "v5p" in kind or kind.strip() == "tpu v5":
        return 2, 24 << 20              # megacore devices: 2 TCs per device
    return 1, 10 << 20                  # unknown: conservative (fits v5e)


def _pick_hw_tile(hw, per_col_bytes, budget_bytes, max_tile=16384):
    """Largest multiple-of-128 tile whose total VMEM footprint fits the budget."""
    cap_cols = max(128, budget_bytes // max(1, per_col_bytes))
    t = (min(int(max_tile), int(cap_cols)) // 128) * 128
    t = max(t, 128)
    if t >= hw:
        return hw        # single full-extent block (valid for any hw, incl. non-128-multiples)
    return t


def _make_kd_kernel(hw, tile, steps_per_core, needs_mask):
    def kernel(y32p_ref, y32t_ref, y3p_ref, y3t_ref,
               dsum_ref, fsse_ref, bsum_ref,
               d_acc, f_acc, b_acc):
        step = pl.program_id(1)

        @pl.when(step == 0)
        def _init():
            d_acc[...] = jnp.zeros_like(d_acc)
            f_acc[...] = jnp.zeros_like(f_acc)
            b_acc[...] = jnp.zeros_like(b_acc)

        # Native-width DMA; upcast to f32 on the VMEM block (required on v5e,
        # which has no bf16 VALU/EUP).
        y32p = y32p_ref[...].astype(jnp.float32)          # (B, 32, T)
        y32t = y32t_ref[...].astype(jnp.float32)
        # Static Ref views for the y_3 channel split (zero-cost views).
        flow_p = y3p_ref[:, 0:2, :].astype(jnp.float32)   # (B, 2, T)
        flow_t = y3t_ref[:, 0:2, :].astype(jnp.float32)
        z = y3p_ref[:, 2:3, :].astype(jnp.float32)        # (B, 1, T)
        # NOTE: sigmoid(x) > 0.5  <=>  x > 0 (exact, including the tie at 0).
        map_t = (y3t_ref[:, 2:3, :] > 0).astype(jnp.float32)

        # y_32 term: running elementwise (true - pred); mean happens in wrapper.
        d_term = y32t - y32p
        # flow term: elementwise (pred - 5*true)^2 over channels 0..1.
        ferr = flow_p - 5.0 * flow_t
        f_term = ferr * ferr
        # map term: numerically-stable BCE-with-logits.
        b_term = jnp.maximum(z, 0.0) - z * map_t + jnp.log1p(jnp.exp(-jnp.abs(z)))

        if needs_mask:
            # Mask padded tail lanes of the last partial block and any
            # core-overhang tiles (their contributions must be exactly zero).
            tile_idx = pl.program_id(0) * steps_per_core + step
            col = tile_idx * tile + lax.broadcasted_iota(jnp.int32, (1, 1, tile), 2)
            valid = col < hw
            d_term = jnp.where(valid, d_term, 0.0)
            f_term = jnp.where(valid, f_term, 0.0)
            b_term = jnp.where(valid, b_term, 0.0)

        # Pure elementwise VALU accumulation; hides under the input DMA stream.
        d_acc[...] += d_term
        f_acc[...] += f_term
        b_acc[...] += b_term

        @pl.when(step == pl.num_programs(1) - 1)
        def _finalize():
            # The only cross-lane/sublane reduction: once per core, per kernel.
            dsum_ref[...] = jnp.sum(d_acc[...], keepdims=True)
            fsse_ref[...] = jnp.sum(f_acc[...], keepdims=True)
            bsum_ref[...] = jnp.sum(b_acc[...], keepdims=True)

    return kernel


def kd_loss_pallas(y_32_pred, y_32_true, y_3_pred, y_3_true, alpha, beta,
                   *, tile_cap=16384):
    """Returns (y_32_loss * alpha, y_3_loss * beta), matching the torch module.

    Inputs may be f32 or bf16 (bf16 halves HBM traffic; the kernel upcasts to
    f32 in VMEM and accumulates in f32).
    """
    B, C32, H, W = y_32_pred.shape
    B3, C3, H3, W3 = y_3_pred.shape
    assert (B, H, W) == (B3, H3, W3) and C3 == 3
    HW = H * W

    # Free contiguous reshapes only -- no HBM copies from slicing or casting.
    y32p = y_32_pred.reshape(B, C32, HW)
    y32t = y_32_true.reshape(B, C32, HW)
    y3p = y_3_pred.reshape(B, C3, HW)
    y3t = y_3_true.reshape(B, C3, HW)

    num_cores, budget_bytes = _device_tpu_config()

    itemsize = jnp.dtype(y_32_pred.dtype).itemsize
    # Per-lane-column footprint: double-buffered blocks of all four streams
    # plus the block-shaped f32 accumulators (32 + 2 + 1 channels).
    per_col = 2 * 2 * B * (C32 + C3) * itemsize + B * (C32 + C3) * 4
    T = _pick_hw_tile(HW, per_col, budget_bytes, max_tile=tile_cap)

    total_steps = _cdiv(HW, T)
    if total_steps < 2:
        num_cores = 1
    steps = _cdiv(total_steps, num_cores)
    needs_mask = (num_cores * steps * T) != HW
    has_overhang = (num_cores * steps) > total_steps
    last_block = total_steps - 1

    if has_overhang:
        # Odd step count on a 2-core split: clamp the overhang tile to the last
        # valid block (it re-reads that tile; the in-kernel mask zeroes it out).
        def _in_map(c, i):
            return (0, 0, jnp.minimum(c * steps + i, last_block))
    else:
        def _in_map(c, i):
            return (0, 0, c * steps + i)

    def _out_map(c, i):
        return (c, 0, 0)

    footprint = per_col * T
    vmem_limit = int(min(max(footprint * 3 // 2 + (8 << 20), 32 << 20), 56 << 20))

    n32 = B * C32 * HW
    nflow = B * 2 * HW
    nmap = B * HW
    in_bytes = sum(int(a.size) * jnp.dtype(a.dtype).itemsize
                   for a in (y32p, y32t, y3p, y3t))
    cost = pl.CostEstimate(
        flops=int(2 * n32 + 4 * nflow + 8 * nmap),
        transcendentals=int(2 * nmap),
        bytes_accessed=int(in_bytes + 3 * num_cores * 4),
    )

    kernel = _make_kd_kernel(HW, T, steps, needs_mask)

    dsum, fsse, bsum = pl.pallas_call(
        kernel,
        out_shape=(jax.ShapeDtypeStruct((num_cores, 1, 1), jnp.float32),) * 3,
        grid=(num_cores, steps),
        in_specs=[
            pl.BlockSpec((B, C32, T), _in_map),
            pl.BlockSpec((B, C32, T), _in_map),
            pl.BlockSpec((B, C3, T), _in_map),
            pl.BlockSpec((B, C3, T), _in_map),
        ],
        out_specs=(
            pl.BlockSpec((1, 1, 1), _out_map),
            pl.BlockSpec((1, 1, 1), _out_map),
            pl.BlockSpec((1, 1, 1), _out_map),
        ),
        scratch_shapes=[
            pltpu.VMEM((B, C32, T), jnp.float32),
            pltpu.VMEM((B, 2, T), jnp.float32),
            pltpu.VMEM((B, 1, T), jnp.float32),
        ],
        compiler_params=pltpu.CompilerParams(
            dimension_semantics=("parallel", "arbitrary"),
            vmem_limit_bytes=vmem_limit,
        ),
        cost_estimate=cost,
    )(y32p, y32t, y3p, y3t)

    # Tiny final scalar math (cross-core combine + means + scaling) in plain JAX.
    d_sum = jnp.sum(dsum)
    f_sse = jnp.sum(fsse)
    b_sum = jnp.sum(bsum)
    y_32_loss = (d_sum / n32) ** 2 * alpha
    y_3_loss = (f_sse / (nflow * 80.0) + b_sum / nmap) * beta
    return y_32_loss, y_3_loss


def kd_loss_ref(y_32_pred, y_32_true, y_3_pred, y_3_true, alpha, beta):
    """Pure-JAX reference mirroring the torch module, for correctness checking."""
    y_32_loss = jnp.mean(y_32_true - y_32_pred) ** 2
    veci = 5.0 * y_3_true[:, :2]
    flow_loss = jnp.mean((y_3_pred[:, :2] - veci) ** 2) / 80.0
    t = (jax.nn.sigmoid(y_3_true[:, 2]) > 0.5).astype(jnp.float32)
    z = y_3_pred[:, 2]
    bce = jnp.maximum(z, 0.0) - z * t + jnp.log1p(jnp.exp(-jnp.abs(z)))
    map_loss = jnp.mean(bce)
    return y_32_loss * alpha, (flow_loss + map_loss) * beta


if __name__ == "__main__":
    alpha, beta = 0.5, 2.0
    key = jax.random.PRNGKey(0)

    # Cases exercise: single-block path, larger 128-multiple spatial dim,
    # non-128-multiple lane dim (full-extent block), multi-tile + masked tail
    # (+ 2-core overhang clamp on v7x), and native-bf16 multi-step streaming.
    cases = [
        ((2, 16, 16), jnp.float32, 16384),
        ((2, 64, 64), jnp.float32, 16384),
        ((2, 10, 10), jnp.float32, 16384),   # HW=100: full-extent single block
        ((2, 48, 48), jnp.float32, 512),     # HW=2304: tiled + masked tail lanes
        ((2, 32, 32), jnp.bfloat16, 256),    # HW=1024: bf16 stream, 4 tiles
    ]
    for (B, H, W), dtype, tile_cap in cases:
        k1, k2, k3, k4, key = jax.random.split(key, 5)
        y_32_pred = jax.random.normal(k1, (B, 32, H, W), dtype=jnp.float32)
        # Offset keeps mean(diff) well away from zero -> numerically stable check.
        y_32_true = jax.random.normal(k2, (B, 32, H, W), dtype=jnp.float32) + 0.3
        y_3_pred = jax.random.normal(k3, (B, 3, H, W), dtype=jnp.float32)
        y_3_true = jax.random.normal(k4, (B, 3, H, W), dtype=jnp.float32)
        inputs = tuple(a.astype(dtype) for a in
                       (y_32_pred, y_32_true, y_3_pred, y_3_true))

        loss32, loss3 = kd_loss_pallas(*inputs, alpha, beta, tile_cap=tile_cap)
        jax.block_until_ready((loss32, loss3))

        ref_in = tuple(a.astype(jnp.float32) for a in inputs)
        ref32, ref3 = kd_loss_ref(*ref_in, alpha, beta)
        np.testing.assert_allclose(np.asarray(loss32), np.asarray(ref32),
                                   rtol=5e-4, atol=1e-6)
        np.testing.assert_allclose(np.asarray(loss3), np.asarray(ref3),
                                   rtol=5e-4, atol=1e-6)

    print("KERNEL_OK")
</pallas_src>

<mosaic_0001>
module attributes {stable_mosaic.version = 11 : i64} {
  func.func @kernel(%arg0: i32, %arg1: i32, %arg2: memref<2x32x256xf32, #tpu.memory_space<vmem>>, %arg3: memref<2x32x256xf32, #tpu.memory_space<vmem>>, %arg4: memref<2x3x256xf32, #tpu.memory_space<vmem>>, %arg5: memref<2x3x256xf32, #tpu.memory_space<vmem>>, %arg6: memref<1x1x1xf32, #tpu.memory_space<vmem>>, %arg7: memref<1x1x1xf32, #tpu.memory_space<vmem>>, %arg8: memref<1x1x1xf32, #tpu.memory_space<vmem>>, %arg9: memref<2x32x256xf32, #tpu.memory_space<vmem>>, %arg10: memref<2x2x256xf32, #tpu.memory_space<vmem>>, %arg11: memref<2x1x256xf32, #tpu.memory_space<vmem>>) attributes {dimension_semantics = [#tpu.dimension_semantics<parallel>, #tpu.dimension_semantics<arbitrary>], iteration_bounds = array<i64: 1, 1>, scalar_prefetch = 0 : i64, scratch_operands = 3 : i64, tpu.core_type = #tpu.core_type<tc>, window_params = [{transform_indices = @transform_0, window_bounds = array<i64: 2, 32, 256>}, {transform_indices = @transform_1, window_bounds = array<i64: 2, 32, 256>}, {transform_indices = @transform_2, window_bounds = array<i64: 2, 3, 256>}, {transform_indices = @transform_3, window_bounds = array<i64: 2, 3, 256>}, {transform_indices = @transform_4, window_bounds = array<i64: 1, 1, 1>}, {transform_indices = @transform_5, window_bounds = array<i64: 1, 1, 1>}, {transform_indices = @transform_6, window_bounds = array<i64: 1, 1, 1>}]} {
    %c0_i32 = arith.constant 0 : i32
    %0 = arith.cmpi eq, %arg1, %c0_i32 : i32
    %1 = arith.extui %0 : i1 to i32
    %c0_i32_0 = arith.constant 0 : i32
    %2 = arith.cmpi ne, %1, %c0_i32_0 : i32
    scf.if %2 {
      %cst_40 = arith.constant 0.000000e+00 : f32
      %40 = vector.broadcast %cst_40 : f32 to vector<2x32x256xf32>
      %c0_41 = arith.constant 0 : index
      %c0_42 = arith.constant 0 : index
      %c0_43 = arith.constant 0 : index
      %41 = vector.load %arg9[%c0_41, %c0_42, %c0_43] : memref<2x32x256xf32, #tpu.memory_space<vmem>>, vector<2x32x256xf32>
      tpu.vector_store %arg9[%c0_41, %c0_42, %c0_43], %40 {strides = array<i32>} : memref<2x32x256xf32, #tpu.memory_space<vmem>>, vector<2x32x256xf32>,
      %cst_44 = arith.constant 0.000000e+00 : f32
      %42 = vector.broadcast %cst_44 : f32 to vector<2x2x256xf32>
      %c0_45 = arith.constant 0 : index
      %c0_46 = arith.constant 0 : index
      %c0_47 = arith.constant 0 : index
      %43 = vector.load %arg10[%c0_45, %c0_46, %c0_47] : memref<2x2x256xf32, #tpu.memory_space<vmem>>, vector<2x2x256xf32>
      tpu.vector_store %arg10[%c0_45, %c0_46, %c0_47], %42 {strides = array<i32>} : memref<2x2x256xf32, #tpu.memory_space<vmem>>, vector<2x2x256xf32>,
      %cst_48 = arith.constant 0.000000e+00 : f32
      %44 = vector.broadcast %cst_48 : f32 to vector<2x1x256xf32>
      %c0_49 = arith.constant 0 : index
      %c0_50 = arith.constant 0 : index
      %c0_51 = arith.constant 0 : index
      %45 = vector.load %arg11[%c0_49, %c0_50, %c0_51] : memref<2x1x256xf32, #tpu.memory_space<vmem>>, vector<2x1x256xf32>
      tpu.vector_store %arg11[%c0_49, %c0_50, %c0_51], %44 {strides = array<i32>} : memref<2x1x256xf32, #tpu.memory_space<vmem>>, vector<2x1x256xf32>,
    } else {
    }
    %c0 = arith.constant 0 : index
    %c0_1 = arith.constant 0 : index
    %c0_2 = arith.constant 0 : index
    %3 = vector.load %arg2[%c0, %c0_1, %c0_2] : memref<2x32x256xf32, #tpu.memory_space<vmem>>, vector<2x32x256xf32>
    %c0_3 = arith.constant 0 : index
    %c0_4 = arith.constant 0 : index
    %c0_5 = arith.constant 0 : index
    %4 = vector.load %arg3[%c0_3, %c0_4, %c0_5] : memref<2x32x256xf32, #tpu.memory_space<vmem>>, vector<2x32x256xf32>
    %c0_6 = arith.constant 0 : index
    %c0_7 = arith.constant 0 : index
    %c0_8 = arith.constant 0 : index
    %5 = vector.load %arg4[%c0_6, %c0_7, %c0_8] : memref<2x3x256xf32, #tpu.memory_space<vmem>>, vector<2x2x256xf32>
    %c0_9 = arith.constant 0 : index
    %c0_10 = arith.constant 0 : index
    %c0_11 = arith.constant 0 : index
    %6 = vector.load %arg5[%c0_9, %c0_10, %c0_11] : memref<2x3x256xf32, #tpu.memory_space<vmem>>, vector<2x2x256xf32>
    %c0_12 = arith.constant 0 : index
    %c2 = arith.constant 2 : index
    %c0_13 = arith.constant 0 : index
    %7 = vector.load %arg4[%c0_12, %c2, %c0_13] : memref<2x3x256xf32, #tpu.memory_space<vmem>>, vector<2x1x256xf32>
    %c0_14 = arith.constant 0 : index
    %c2_15 = arith.constant 2 : index
    %c0_16 = arith.constant 0 : index
    %8 = vector.load %arg5[%c0_14, %c2_15, %c0_16] : memref<2x3x256xf32, #tpu.memory_space<vmem>>, vector<2x1x256xf32>
    %cst = arith.constant 0.000000e+00 : f32
    %9 = vector.broadcast %cst : f32 to vector<2x1x256xf32>
    %10 = arith.cmpf ogt, %8, %9 : vector<2x1x256xf32>
    %11 = arith.extui %10 : vector<2x1x256xi1> to vector<2x1x256xi32>
    %12 = arith.sitofp %11 : vector<2x1x256xi32> to vector<2x1x256xf32>
    %13 = arith.subf %4, %3 : vector<2x32x256xf32>
    %cst_17 = arith.constant 5.000000e+00 : f32
    %14 = vector.broadcast %cst_17 : f32 to vector<2x2x256xf32>
    %15 = arith.mulf %14, %6 : vector<2x2x256xf32>
    %16 = arith.subf %5, %15 : vector<2x2x256xf32>
    %17 = arith.mulf %16, %16 : vector<2x2x256xf32>
    %cst_18 = arith.constant 0.000000e+00 : f32
    %18 = vector.broadcast %cst_18 : f32 to vector<2x1x256xf32>
    %19 = arith.maximumf %7, %18 : vector<2x1x256xf32>
    %20 = arith.mulf %7, %12 : vector<2x1x256xf32>
    %21 = arith.subf %19, %20 : vector<2x1x256xf32>
    %22 = math.absf %7 : vector<2x1x256xf32>
    %cst_19 = arith.constant 0.000000e+00 : f32
    %23 = vector.broadcast %cst_19 : f32 to vector<2x1x256xf32>
    %24 = arith.subf %23, %22 : vector<2x1x256xf32>
    %25 = math.exp %24 : vector<2x1x256xf32>
    %26 = math.log1p %25 : vector<2x1x256xf32>
    %27 = arith.addf %21, %26 : vector<2x1x256xf32>
    %c0_20 = arith.constant 0 : index
    %c0_21 = arith.constant 0 : index
    %c0_22 = arith.constant 0 : index
    %28 = vector.load %arg9[%c0_20, %c0_21, %c0_22] : memref<2x32x256xf32, #tpu.memory_space<vmem>>, vector<2x32x256xf32>
    %29 = arith.addf %28, %13 : vector<2x32x256xf32>
    %c0_23 = arith.constant 0 : index
    %c0_24 = arith.constant 0 : index
    %c0_25 = arith.constant 0 : index
    %30 = vector.load %arg9[%c0_23, %c0_24, %c0_25] : memref<2x32x256xf32, #tpu.memory_space<vmem>>, vector<2x32x256xf32>
    tpu.vector_store %arg9[%c0_23, %c0_24, %c0_25], %29 {strides = array<i32>} : memref<2x32x256xf32, #tpu.memory_space<vmem>>, vector<2x32x256xf32>,
    %c0_26 = arith.constant 0 : index
    %c0_27 = arith.constant 0 : index
    %c0_28 = arith.constant 0 : index
    %31 = vector.load %arg10[%c0_26, %c0_27, %c0_28] : memref<2x2x256xf32, #tpu.memory_space<vmem>>, vector<2x2x256xf32>
    %32 = arith.addf %31, %17 : vector<2x2x256xf32>
    %c0_29 = arith.constant 0 : index
    %c0_30 = arith.constant 0 : index
    %c0_31 = arith.constant 0 : index
    %33 = vector.load %arg10[%c0_29, %c0_30, %c0_31] : memref<2x2x256xf32, #tpu.memory_space<vmem>>, vector<2x2x256xf32>
    tpu.vector_store %arg10[%c0_29, %c0_30, %c0_31], %32 {strides = array<i32>} : memref<2x2x256xf32, #tpu.memory_space<vmem>>, vector<2x2x256xf32>,
    %c0_32 = arith.constant 0 : index
    %c0_33 = arith.constant 0 : index
    %c0_34 = arith.constant 0 : index
    %34 = vector.load %arg11[%c0_32, %c0_33, %c0_34] : memref<2x1x256xf32, #tpu.memory_space<vmem>>, vector<2x1x256xf32>
    %35 = arith.addf %34, %27 : vector<2x1x256xf32>
    %c0_35 = arith.constant 0 : index
    %c0_36 = arith.constant 0 : index
    %c0_37 = arith.constant 0 : index
    %36 = vector.load %arg11[%c0_35, %c0_36, %c0_37] : memref<2x1x256xf32, #tpu.memory_space<vmem>>, vector<2x1x256xf32>
    tpu.vector_store %arg11[%c0_35, %c0_36, %c0_37], %35 {strides = array<i32>} : memref<2x1x256xf32, #tpu.memory_space<vmem>>, vector<2x1x256xf32>,
    %c0_i32_38 = arith.constant 0 : i32
    %37 = arith.cmpi eq, %arg1, %c0_i32_38 : i32
    %38 = arith.extui %37 : i1 to i32
    %c0_i32_39 = arith.constant 0 : i32
    %39 = arith.cmpi ne, %38, %c0_i32_39 : i32
    scf.if %39 {
      %c0_40 = arith.constant 0 : index
      %c0_41 = arith.constant 0 : index
      %c0_42 = arith.constant 0 : index
      %40 = vector.load %arg9[%c0_40, %c0_41, %c0_42] : memref<2x32x256xf32, #tpu.memory_space<vmem>>, vector<2x32x256xf32>
      %41 = vector.shape_cast %40 : vector<2x32x256xf32> to vector<1x2x32x256xf32>
      %cst_43 = arith.constant dense<0.000000e+00> : vector<1xf32>
      %42 = vector.multi_reduction <add>, %41, %cst_43 [1, 2, 3] : vector<1x2x32x256xf32> to vector<1xf32>
      %43 = vector.shape_cast %42 : vector<1xf32> to vector<1x1x1x1xf32>
      %44 = vector.extract %43[0, 0, 0, 0] : f32 from vector<1x1x1x1xf32>
      %45 = vector.broadcast %44 : f32 to vector<1x1x1xf32>
      %c0_44 = arith.constant 0 : index
      %c0_45 = arith.constant 0 : index
      %c0_46 = arith.constant 0 : index
      %46 = vector.load %arg6[%c0_44, %c0_45, %c0_46] : memref<1x1x1xf32, #tpu.memory_space<vmem>>, vector<1x1x1xf32>
      tpu.vector_store %arg6[%c0_44, %c0_45, %c0_46], %45 {strides = array<i32>} : memref<1x1x1xf32, #tpu.memory_space<vmem>>, vector<1x1x1xf32>,
      %c0_47 = arith.constant 0 : index
      %c0_48 = arith.constant 0 : index
      %c0_49 = arith.constant 0 : index
      %47 = vector.load %arg10[%c0_47, %c0_48, %c0_49] : memref<2x2x256xf32, #tpu.memory_space<vmem>>, vector<2x2x256xf32>
      %48 = vector.shape_cast %47 : vector<2x2x256xf32> to vector<1x2x2x256xf32>
      %cst_50 = arith.constant dense<0.000000e+00> : vector<1xf32>
      %49 = vector.multi_reduction <add>, %48, %cst_50 [1, 2, 3] : vector<1x2x2x256xf32> to vector<1xf32>
      %50 = vector.shape_cast %49 : vector<1xf32> to vector<1x1x1x1xf32>
      %51 = vector.extract %50[0, 0, 0, 0] : f32 from vector<1x1x1x1xf32>
      %52 = vector.broadcast %51 : f32 to vector<1x1x1xf32>
      %c0_51 = arith.constant 0 : index
      %c0_52 = arith.constant 0 : index
      %c0_53 = arith.constant 0 : index
      %53 = vector.load %arg7[%c0_51, %c0_52, %c0_53] : memref<1x1x1xf32, #tpu.memory_space<vmem>>, vector<1x1x1xf32>
      tpu.vector_store %arg7[%c0_51, %c0_52, %c0_53], %52 {strides = array<i32>} : memref<1x1x1xf32, #tpu.memory_space<vmem>>, vector<1x1x1xf32>,
      %c0_54 = arith.constant 0 : index
      %c0_55 = arith.constant 0 : index
      %c0_56 = arith.constant 0 : index
      %54 = vector.load %arg11[%c0_54, %c0_55, %c0_56] : memref<2x1x256xf32, #tpu.memory_space<vmem>>, vector<2x1x256xf32>
      %55 = vector.shape_cast %54 : vector<2x1x256xf32> to vector<1x2x1x256xf32>
      %cst_57 = arith.constant dense<0.000000e+00> : vector<1xf32>
      %56 = vector.multi_reduction <add>, %55, %cst_57 [1, 2, 3] : vector<1x2x1x256xf32> to vector<1xf32>
      %57 = vector.shape_cast %56 : vector<1xf32> to vector<1x1x1x1xf32>
      %58 = vector.extract %57[0, 0, 0, 0] : f32 from vector<1x1x1x1xf32>
      %59 = vector.broadcast %58 : f32 to vector<1x1x1xf32>
      %c0_58 = arith.constant 0 : index
      %c0_59 = arith.constant 0 : index
      %c0_60 = arith.constant 0 : index
      %60 = vector.load %arg8[%c0_58, %c0_59, %c0_60] : memref<1x1x1xf32, #tpu.memory_space<vmem>>, vector<1x1x1xf32>
      tpu.vector_store %arg8[%c0_58, %c0_59, %c0_60], %59 {strides = array<i32>} : memref<1x1x1xf32, #tpu.memory_space<vmem>>, vector<1x1x1xf32>,
    } else {
    }
    return
  }
  func.func @transform_0(%arg0: i32, %arg1: i32) -> (i32, i32, i32) {
    %c1_i32 = arith.constant 1 : i32
    %0 = arith.muli %arg0, %c1_i32 : i32
    %1 = arith.addi %0, %arg1 : i32
    %c0_i32 = arith.constant 0 : i32
    %c0_i32_0 = arith.constant 0 : i32
    %c0_i32_1 = arith.constant 0 : i32
    return %c0_i32, %c0_i32_0, %1 : i32, i32, i32
  }
  func.func @transform_1(%arg0: i32, %arg1: i32) -> (i32, i32, i32) {
    %c1_i32 = arith.constant 1 : i32
    %0 = arith.muli %arg0, %c1_i32 : i32
    %1 = arith.addi %0, %arg1 : i32
    %c0_i32 = arith.constant 0 : i32
    %c0_i32_0 = arith.constant 0 : i32
    %c0_i32_1 = arith.constant 0 : i32
    return %c0_i32, %c0_i32_0, %1 : i32, i32, i32
  }
  func.func @transform_2(%arg0: i32, %arg1: i32) -> (i32, i32, i32) {
    %c1_i32 = arith.constant 1 : i32
    %0 = arith.muli %arg0, %c1_i32 : i32
    %1 = arith.addi %0, %arg1 : i32
    %c0_i32 = arith.constant 0 : i32
    %c0_i32_0 = arith.constant 0 : i32
    %c0_i32_1 = arith.constant 0 : i32
    return %c0_i32, %c0_i32_0, %1 : i32, i32, i32
  }
  func.func @transform_3(%arg0: i32, %arg1: i32) -> (i32, i32, i32) {
    %c1_i32 = arith.constant 1 : i32
    %0 = arith.muli %arg0, %c1_i32 : i32
    %1 = arith.addi %0, %arg1 : i32
    %c0_i32 = arith.constant 0 : i32
    %c0_i32_0 = arith.constant 0 : i32
    %c0_i32_1 = arith.constant 0 : i32
    return %c0_i32, %c0_i32_0, %1 : i32, i32, i32
  }
  func.func @transform_4(%arg0: i32, %arg1: i32) -> (i32, i32, i32) {
    %c0_i32 = arith.constant 0 : i32
    %c0_i32_0 = arith.constant 0 : i32
    %c0_i32_1 = arith.constant 0 : i32
    return %arg0, %c0_i32, %c0_i32_0 : i32, i32, i32
  }
  func.func @transform_5(%arg0: i32, %arg1: i32) -> (i32, i32, i32) {
    %c0_i32 = arith.constant 0 : i32
    %c0_i32_0 = arith.constant 0 : i32
    %c0_i32_1 = arith.constant 0 : i32
    return %arg0, %c0_i32, %c0_i32_0 : i32, i32, i32
  }
  func.func @transform_6(%arg0: i32, %arg1: i32) -> (i32, i32, i32) {
    %c0_i32 = arith.constant 0 : i32
    %c0_i32_0 = arith.constant 0 : i32
    %c0_i32_1 = arith.constant 0 : i32
    return %arg0, %c0_i32, %c0_i32_0 : i32, i32, i32
  }
}

</mosaic_0001>

<bundles_post_ra>
// kernel: tpu_custom_call.1
= control target key start
LH: loop header
LB: loop body
LE: loop exit
PB: predicated region body
PF: predicated region fallthrough
CT: control target
= control target key end

     0   :  { %12 = vsyncpa [#allocation6], 0  ;;  %s826_s0 = inlined_call_operand.hbm [shape: f32[2,32,256], index: 0, kind: input, shape index: {}]   ;;  %s827_s1 = inlined_call_operand.hbm [shape: f32[2,32,256], index: 1, kind: input, shape index: {}]   ;;  %s828_s2 = inlined_call_operand.vmem [shape: f32[2,3,256], index: 2, kind: input, shape index: {}]   ;;  %s829_s3 = inlined_call_operand.vmem [shape: f32[2,3,256], index: 3, kind: input, shape index: {}]   ;;  %s830_s4 = inlined_call_operand.hbm [shape: f32[1,1,1], index: 4, kind: output, shape index: {0}]   ;;  %s831_s5 = inlined_call_operand.hbm [shape: f32[1,1,1], index: 5, kind: output, shape index: {1}]   ;;  %s832_s6 = inlined_call_operand.hbm [shape: f32[1,1,1], index: 6, kind: output, shape index: {2}]  }
   0x1   :  { %13 = vsyncpa [#allocation9], 0 }
   0x2   :  { %14 = vsyncpa [#allocation7], 0 }
   0x3   :  { %15 = vsyncpa [#allocation12], 0  ;;  %s658_s21 = smov [#allocation5]   ;;  %s540_s25 = scalar_lea.hbm %s826_s0, 2048 }
   0x4   :  { %s25_s22 = sshll.u32 %s658_s21, 4  ;;  %p541_p0 = scmp.ne.s32.totalorder %s826_s0, %s540_s25  ;;  %s26_s22 = int_to_ptr.vmem [resolvable:$true] %s25_s22 }
   0x5   :  { %p544_p1 = scmp.lt.u32.totalorder %s540_s25, %s826_s0 }
   0x7   :  { %p546_p2 = pnand %p544_p1, %p541_p0 }
   0x9   :  { %549 = shalt.err (!%p546_p2)
}
   0xa   :  { %s550_s30 = scalar_lea.vmem %s26_s22, 2048  ;;  %p555_p4 = scmp.lt.s32.totalorder %s26_s22, %s26_s22 }
   0xb   :  { %p551_p3 = scmp.ne.s32.totalorder %s26_s22, %s550_s30  ;;  %p556_p5 = scmp.lt.s32.totalorder %s550_s30, %s550_s30 }
   0xd   :  { %p557_p6 = por %p556_p5, %p555_p4 }
   0xf   :  { %p558_p7 = pnand %p557_p6, %p551_p3 }
  0x11   :  { %561 = shalt.err (!%p558_p7)
}
  0x12   :  { %s659_s7 = smov 256   ;;  %s660_s8 = smov 16  }
  0x13   :  { %31 = dma.hbm_to_vmem [thread:$0]  %s826_s0, 2048, %s26_s22, [#allocation6], %s659_s7, %s659_s7, %s660_s8  }
  0x14   :  { %s661_s11 = smov [#allocation8]   ;;  %s562_s15 = scalar_lea.hbm %s827_s1, 2048 }
  0x15   :  { %s41_s12 = sshll.u32 %s661_s11, 4  ;;  %p563_p8 = scmp.ne.s32.totalorder %s827_s1, %s562_s15  ;;  %s42_s12 = int_to_ptr.vmem [resolvable:$true] %s41_s12 }
  0x16   :  { %p566_p9 = scmp.lt.u32.totalorder %s562_s15, %s827_s1 }
  0x18   :  { %p568_p10 = pnand %p566_p9, %p563_p8 }
  0x1a   :  { %571 = shalt.err (!%p568_p10)
}
  0x1b   :  { %s572_s20 = scalar_lea.vmem %s42_s12, 2048  ;;  %p577_p12 = scmp.lt.s32.totalorder %s42_s12, %s42_s12 }
  0x1c   :  { %p573_p11 = scmp.ne.s32.totalorder %s42_s12, %s572_s20  ;;  %p578_p13 = scmp.lt.s32.totalorder %s572_s20, %s572_s20 }
  0x1e   :  { %p579_p0 = por %p578_p13, %p577_p12 }
  0x20   :  { %p580_p1 = pnand %p579_p0, %p573_p11 }
  0x22   :  { %583 = shalt.err (!%p580_p1)
}
  0x23   :  { %47 = dma.hbm_to_vmem [thread:$0]  %s827_s1, 2048, %s42_s12, [#allocation9], %s659_s7, %s659_s7, %s660_s8  }
  0x24   :  { %650 = dma.done.wait [#allocation6], 2048  }
  0x25   :  { %651 = vsyncadd [#allocation6], 4294965248 }
  0x26   :  { %652 = dma.done.wait [#allocation9], 2048  }
  0x27   :  { %653 = vsyncadd [#allocation9], 4294965248  ;;  %v128_v0 = vlaneseq  ;;  %v662_v1 = vmov 0.0   ;;  %v134_v3 = vld [vmem:[#allocation5] sm:$0xff]  ;;  %v135_v4 = vld [vmem:[#allocation5 + $0x8] sm:$0xff]  ;;  %vm392_vm1 = vcmask 1041408  }
  0x28   :  { %126 = vst [vmem:[#allocation3] sm:$0xf] %v662_v1  ;;  %127 = vst [vmem:[#allocation3 + $0x4] sm:$0xf] %v662_v1  ;;  %v136_v5 = vld [vmem:[#allocation5 + $0x10] sm:$0xff]  ;;  %v137_v6 = vld [vmem:[#allocation5 + $0x18] sm:$0xff] }
  0x29   :  { %vm728_vm0 = vcmp.lt.s32.totalorder %v128_v0, 256  ;;  %v150_v7 = vld [vmem:[#allocation8] sm:$0xff]  ;;  %v151_v8 = vld [vmem:[#allocation8 + $0x8] sm:$0xff]  ;;  %v663_v9 = vmov 1983009808   ;;  %v152_v11 = vld [vmem:[#allocation8 + $0x10] sm:$0xff] }
  0x2a   :  { %132 = vst.msk [vmem:[#allocation4] sm:$0x3] %vm728_vm0, %v662_v1  ;;  %133 = vst.msk [vmem:[#allocation4 + $0x2] sm:$0x3] %vm728_vm0, %v662_v1  ;;  %v293_v10 = vunpack.c.l.s4 %v663_v9  ;;  %v153_v12 = vld [vmem:[#allocation8 + $0x18] sm:$0xff]  ;;  %v184_v13 = vsub.f32 %v150_v7, %v134_v3  ;;  %v185_v14 = vsub.f32 %v151_v8, %v135_v4  ;;  %v138_v15 = vld [vmem:[#allocation5 + $0x20] sm:$0xff]  ;;  %v186_v17 = vsub.f32 %v152_v11, %v136_v5 }
  0x2b   :  { %v154_v16 = vld [vmem:[#allocation8 + $0x20] sm:$0xff]  ;;  %v187_v18 = vsub.f32 %v153_v12, %v137_v6  ;;  %v139_v20 = vld [vmem:[#allocation5 + $0x28] sm:$0xff]  ;;  %v738_v23 = vshrl.u32 %v128_v0, 7  ;;  %v140_v24 = vld [vmem:[#allocation5 + $0x30] sm:$0xff]  ;;  %vm435_vm6 = vcmask 1040384   ;;  %vm366_vm7 = vcmask 0  }
  0x2c   :  { %v341_v19 = vadd.f32 %v185_v14, %v184_v13  ;;  %v155_v21 = vld [vmem:[#allocation8 + $0x28] sm:$0xff]  ;;  %v294_v22 = vunpack.c.0.s8 %v293_v10  ;;  %v156_v25 = vld [vmem:[#allocation8 + $0x30] sm:$0xff]  ;;  %v188_v26 = vsub.f32 %v154_v16, %v138_v15  ;;  %v167_v29 = vld [vmem:[%s828_s2 + $0x8] sm:$0x33]  ;;  %s665_s14 = smov [#allocation11]  }
  0x2d   :  { %v166_v28 = vld [vmem:[%s828_s2] sm:$0x33]  ;;  %v169_v31 = vld [vmem:[%s829_s3 + $0x8] sm:$0x33]  ;;  %v189_v32 = vsub.f32 %v155_v21, %v139_v20  ;;  %v190_v39 = vsub.f32 %v156_v25, %v140_v24  ;;  %v143_v47 = vld [vmem:[#allocation5 + $0x48] sm:$0xff]  ;;  %s470_s15 = sshll.u32 %s665_s14, 4  ;;  %s471_s15 = int_to_ptr.vmem [resolvable:$true] %s470_s15 }
  0x2e   :  { %v342_v27 = vadd.f32 %v341_v19, %v186_v17  ;;  %v168_v30 = vld [vmem:[%s829_s3] sm:$0x33]  ;;  %v201_v35 = vmul.f32 5.0, %v169_v31  ;;  %v297_v38 = vsub.s32 %v294_v22, %v738_v23  ;;  %v756_v43 = vld [vmem:[%s828_s2 + $0x2] ss:$4 sm:$0x3] }
  0x2f   :  { %v200_v34 = vmul.f32 5.0, %v168_v30  ;;  %v141_v36 = vld [vmem:[#allocation5 + $0x38] sm:$0xff]  ;;  %v142_v45 = vld [vmem:[#allocation5 + $0x40] sm:$0xff]  ;;  %v159_v48 = vld [vmem:[#allocation8 + $0x48] sm:$0xff]  ;;  %v212_v55 = vand.u32 2147483647, %v756_v43 }
  0x30   :  { %v343_v33 = vadd.f32 %v342_v27, %v187_v18  ;;  %v157_v37 = vld [vmem:[#allocation8 + $0x38] sm:$0xff]  ;;  %v203_v42 = vsub.f32 %v167_v29, %v201_v35  ;;  %v158_v46 = vld [vmem:[#allocation8 + $0x40] sm:$0xff]  ;;  %v288_v53 = vld [vmem:[#allocation3] sm:$0xf]  ;;  %v193_v3 = vsub.f32 %v159_v48, %v143_v47 }
  0x31   :  { %v202_v41 = vsub.f32 %v166_v28, %v200_v34  ;;  %v761_v44 = vld [vmem:[%s828_s2 + $0xa] ss:$4 sm:$0x3]  ;;  %v191_v49 = vsub.f32 %v157_v37, %v141_v36  ;;  %v289_v54 = vld [vmem:[#allocation3 + $0x4] sm:$0xf]  ;;  %v192_v57 = vsub.f32 %v158_v46, %v142_v45  ;;  %v144_v61 = vld [vmem:[#allocation5 + $0x50] sm:$0xff] }
  0x32   :  { %v344_v40 = vadd.f32 %v343_v33, %v188_v26  ;;  %v205_v52 = vmul.f32 %v203_v42, %v203_v42  ;;  %v213_v56 = vand.u32 2147483647, %v761_v44  ;;  %v160_v62 = vld [vmem:[#allocation8 + $0x50] sm:$0xff]  ;;  %v214_v63 = vsub.f32 0.0, %v212_v55  ;;  %v145_v7 = vld [vmem:[#allocation5 + $0x58] sm:$0xff]  ;;  %v146_v13 = vld [vmem:[#allocation5 + $0x60] sm:$0xff] }
  0x33   :  { %v204_v51 = vmul.f32 %v202_v41, %v202_v41  ;;  %v161_v8 = vld [vmem:[#allocation8 + $0x58] sm:$0xff]  ;;  %v194_v11 = vsub.f32 %v160_v62, %v144_v61  ;;  %v162_v14 = vld [vmem:[#allocation8 + $0x60] sm:$0xff]  ;;  %v147_v17 = vld [vmem:[#allocation5 + $0x68] sm:$0xff]  ;;  %v207_v62 = vmax.f32 %v761_v44, 0.0 }
  0x34   :  { %v345_v50 = vadd.f32 %v344_v40, %v189_v32  ;;  %v305_v60 = vrot.slane %v205_v52, %v297_v38  ;;  %v215_v0 = vsub.f32 0.0, %v213_v56  ;;  %v216_v9 = vmul.f32 1.442695, %v214_v63  ;;  %v163_v18 = vld [vmem:[#allocation8 + $0x68] sm:$0xff]  ;;  %v148_v21 = vld [vmem:[#allocation5 + $0x70] sm:$0xff]  ;;  %v149_v26 = vld [vmem:[#allocation5 + $0x78] sm:$0xff] }
  0x35   :  { %v298_v59 = vrot.slane %v204_v51, %v297_v38  ;;  %v195_v15 = vsub.f32 %v161_v8, %v145_v7  ;;  %v196_v19 = vsub.f32 %v162_v14, %v146_v13  ;;  %v164_v22 = vld [vmem:[#allocation8 + $0x70] sm:$0xff]  ;;  %v197_v24 = vsub.f32 %v163_v18, %v147_v17  ;;  %v165_v27 = vld [vmem:[#allocation8 + $0x78] sm:$0xff] }
  0x36   :  { %v346_v58 = vadd.f32 %v345_v50, %v190_v39  ;;  %v309_v6 = vadd.f32 %v305_v60, %v289_v54  ;;  %v218_v10 = vmul.f32 1.442695, %v215_v0  ;;  %532 = vpow2.f32 %v216_v9  ;;  %v511_v41 = vld [vmem:[%s829_s3 + $0x2] ss:$4 sm:$0x3] }
  0x37   :  { %v308_v5 = vadd.f32 %v298_v59, %v288_v53  ;;  %v198_v29 = vsub.f32 %v164_v22, %v148_v21  ;;  %v199_v35 = vsub.f32 %v165_v27, %v149_v26  ;;  %v512_v46 = vld [vmem:[%s829_s3 + $0xa] ss:$4 sm:$0x3]  ;;  %vm178_vm2 = vcmp.gt.f32.partialorder %v511_v41, 0.0  ;;  %s664_s3 = smov [#allocation10]  }
  0x38   :  { %v347_v4 = vadd.f32 %v346_v58, %v191_v49  ;;  %311 = vst [vmem:[#allocation3 + $0x4] sm:$0xf] %v309_v6  ;;  %534 = vpow2.f32 %v218_v10  ;;  %vm179_vm3 = vcmp.gt.f32.partialorder %v512_v46, 0.0  ;;  %v513_v55 = vsel %vm178_vm2, 1.0, %v662_v1  ;;  %v313_v13 = vld [vmem:[#allocation4 + $0x2] sm:$0x3] }
  0x39   :  { %310 = vst [vmem:[#allocation3] sm:$0xf] %v308_v5  ;;  %v514_v56 = vsel %vm179_vm3, 1.0, %v662_v1  ;;  %v206_v58 = vmax.f32 %v756_v43, 0.0  ;;  %v208_v59 = vmul.f32 %v513_v55, %v756_v43  ;;  %v421_v17 = vsub.s32 1, %v738_v23  ;;  %s460_s12 = sshll.u32 %s664_s3, 4  ;;  %s461_s12 = int_to_ptr.vmem [resolvable:$true] %s460_s12 }
  0x3a   :  { %v348_v12 = vadd.f32 %v347_v4, %v192_v57  ;;  %v209_v63 = vmul.f32 %v514_v56, %v761_v44  ;;  %v417_v44 = vsub.s32 0, %v738_v23  ;;  %s584_s16 = scalar_lea.vmem %s461_s12, 16  ;;  %s588_s17 = scalar_lea.vmem %s461_s12, 32 }
  0x3b   :  { %v210_v5 = vsub.f32 %v206_v58, %v208_v59  ;;  %p585_p2 = scmp.ne.s32.totalorder %s461_s12, %s584_s16  ;;  %p589_p3 = scmp.lt.s32.totalorder %s461_s12, %s461_s12 }
  0x3c   :  { %v349_v16 = vadd.f32 %v348_v12, %v193_v3  ;;  %v211_v1 = vsub.f32 %v207_v62, %v209_v63  ;;  %p590_p4 = scmp.lt.s32.totalorder %s588_s17, %s584_s16 }
  0x3e   :  { %v350_v20 = vadd.f32 %v349_v16, %v194_v11  ;;  %v312_v11 = vld [vmem:[#allocation4] sm:$0x3]  ;;  %p591_p5 = por %p590_p4, %p589_p3 }
  0x3f   :  { %v516_v31 = vld.sshfl [vmem:[#allocation3 + $0x4] sm:$0x33 pattern:$0x76325410] }
  0x40   :  { %v351_v25 = vadd.f32 %v350_v20, %v195_v15  ;;  %v515_v28 = vld.sshfl [vmem:[#allocation3] sm:$0x33 pattern:$0x76325410]  ;;  %v387_v34 = vcombine.high %v516_v31, %v516_v31  ;;  %v396_v38 = vsel %vm392_vm1, %v516_v31, 0.0  ;;  %v533_v39 = vpop.eup %532  ;;  %p592_p6 = pnand %p591_p5, %p585_p2 }
  0x41   :  { %v379_v32 = vcombine.high %v515_v28, %v515_v28  ;;  %v393_v33 = vsel %vm392_vm1, %v515_v28, 0.0  ;;  %v220_v47 = vadd.f32 1.0, %v533_v39  ;;  %v223_v52 = vmul.f32 -0.5, %v533_v39 }
  0x42   :  { %v352_v30 = vadd.f32 %v351_v25, %v196_v19  ;;  %v535_v42 = vpop.eup %534  ;;  %v398_v49 = vsel %vm392_vm1, %v387_v34, 0.0  ;;  %v226_v60 = vand.u32 2147483647, %v533_v39 }
  0x43   :  { %v394_v37 = vsel %vm392_vm1, %v379_v32, 0.0  ;;  %v229_v50 = vadd.f32 1.0, %v535_v42  ;;  %536 = vlog2.f32 %v220_v47  ;;  %v232_v54 = vmul.f32 -0.5, %v535_v42 }
  0x44   :  { %v353_v36 = vadd.f32 %v352_v30, %v197_v24  ;;  %v395_v40 = vadd.f32 %v394_v37, %v393_v33  ;;  %v224_v57 = vadd.f32 1.0, %v223_v52  ;;  %v235_v0 = vand.u32 2147483647, %v535_v42 }
  0x45   :  { %538 = vlog2.f32 %v229_v50  ;;  %v233_v61 = vadd.f32 1.0, %v232_v54  ;;  %vm227_vm4 = vcmp.lt.f32.partialorder %v226_v60, 0.0004427343 }
  0x46   :  { %v354_v45 = vadd.f32 %v353_v36, %v198_v29  ;;  %v397_v48 = vadd.f32 %v396_v38, %v395_v40  ;;  %v225_v3 = vmul.f32 %v533_v39, %v224_v57  ;;  %vm236_vm5 = vcmp.lt.f32.partialorder %v235_v0, 0.0004427343 }
  0x47   :  { %v234_v6 = vmul.f32 %v535_v42, %v233_v61 }
  0x48   :  { %v355_v51 = vadd.f32 %v354_v45, %v199_v35  ;;  %v399_v53 = vadd.f32 %v398_v49, %v397_v48 }
  0x4a   :  { %356 = vadd.xlane.f32.xlu0 %v355_v51 }
  0x4d   :  { %v537_v4 = vpop.eup %536 }
  0x4e   :  { %400 = vadd.xlane.f32.xlu0 %v399_v53  ;;  %v222_v8 = vmul.f32 0.6931472, %v537_v4 }
  0x4f   :  { %v539_v7 = vpop.eup %538 }
  0x50   :  { %v231_v9 = vmul.f32 0.6931472, %v539_v7  ;;  %v228_v10 = vsel %vm227_vm4, %v225_v3, %v222_v8 }
  0x51   :  { %v238_v12 = vadd.f32 %v228_v10, %v210_v5 }
  0x52   :  { %v237_v43 = vsel %vm236_vm5, %v234_v6, %v231_v9 }
  0x53   :  { %v239_v14 = vadd.f32 %v237_v43, %v211_v1  ;;  %v314_v15 = vadd.f32 %v312_v11, %v238_v12 }
  0x55   :  { %v315_v16 = vadd.f32 %v313_v13, %v239_v14  ;;  %320 = vst.msk [vmem:[#allocation4] sm:$0x3] %vm728_vm0, %v314_v15 }
  0x57   :  { %321 = vst.msk [vmem:[#allocation4 + $0x2] sm:$0x3] %vm728_vm0, %v315_v16 }
  0x5c   :  { %v411_v18 = vld [vmem:[#allocation4] sm:$0x3] }
  0x5d   :  { %v418_v20 = vrot.slane %v411_v18, %v417_v44  ;;  %v422_v21 = vrot.slane %v411_v18, %v421_v17 }
  0x5e   :  { %v412_v19 = vld [vmem:[#allocation4 + $0x2] sm:$0x3] }
  0x5f   :  { %v426_v22 = vrot.slane %v412_v19, %v417_v44  ;;  %v430_v24 = vrot.slane %v412_v19, %v421_v17  ;;  %v436_v25 = vsel %vm435_vm6, %v418_v20, 0.0  ;;  %v437_v26 = vsel %vm435_vm6, %v422_v21, 0.0 }
  0x60   :  { %v438_v27 = vadd.f32 %v437_v26, %v436_v25 }
  0x61   :  { %v439_v28 = vsel %vm435_vm6, %v426_v22, 0.0  ;;  %v441_v29 = vsel %vm435_vm6, %v430_v24, 0.0 }
  0x62   :  { %v440_v30 = vadd.f32 %v439_v28, %v438_v27 }
  0x64   :  { %v442_v31 = vadd.f32 %v441_v29, %v440_v30 }
  0x66   :  { %443 = vadd.xlane.f32.xlu1 %v442_v31 }
  0xd7   :  { %v357_v2 = vpop.xlane.xlu0 %356 }
  0xd8   :  { %v358_v32 = vrot.slane %v357_v2, 4 }
  0xda   :  { %v359_v33 = vadd.f32 %v358_v32, %v357_v2 }
  0xdb   :  { %v401_v34 = vpop.xlane.xlu0 %400 }
  0xdc   :  { %v360_v23 = vrot.slane %v359_v33, 2  ;;  %v402_v35 = vrot.slane %v401_v34, 4 }
  0xde   :  { %v403_v36 = vadd.f32 %v402_v35, %v401_v34  ;;  %v361_v37 = vadd.f32 %v360_v23, %v359_v33 }
  0xe0   :  { %v404_v38 = vrot.slane %v403_v36, 2  ;;  %v362_v39 = vrot.slane %v361_v37, 1 }
  0xe2   :  { %v405_v40 = vadd.f32 %v404_v38, %v403_v36  ;;  %v363_v41 = vadd.f32 %v362_v39, %v361_v37 }
  0xe4   :  { %517 = vpush %v363_v41  ;;  %v406_v42 = vrot.slane %v405_v40, 1 }
  0xe6   :  { %v407_v45 = vadd.f32 %v406_v42, %v405_v40 }
  0xe8   :  { %519 = vpush %v407_v45 }
  0xf3   :  { %v444_v46 = vpop.xlane.xlu1 %443 }
  0xf4   :  { %v445_v47 = vrot.slane %v444_v46, 4 }
  0xf6   :  { %v446_v48 = vadd.f32 %v445_v47, %v444_v46 }
  0xf8   :  { %v447_v49 = vrot.slane %v446_v48, 2 }
  0xfa   :  { %v448_v50 = vadd.f32 %v447_v49, %v446_v48 }
  0xfc   :  { %v449_v51 = vrot.slane %v448_v50, 1 }
  0xfe   :  { %v450_v52 = vadd.f32 %v449_v51, %v448_v50 }
 0x100   :  { %521 = vpush %v450_v52 }
 0x115   :  { %s518_s13 = spop %517 }
 0x116   :  { %v365_v53 = vstv %s518_s13 }
 0x117   :  { %367 = vst.msk [vmem:[#allocation10] sm:$0x1] %vm366_vm7, %v365_v53 }
 0x118   :  { %595 = shalt.err (!%p592_p6)
}
 0x119   :  { %s596_s20 = scalar_lea.hbm %s830_s4, 16 }
 0x11a   :  { %p597_p7 = scmp.ne.s32.totalorder %s830_s4, %s596_s20  ;;  %p600_p8 = scmp.lt.u32.totalorder %s596_s20, %s830_s4 }
 0x11c   :  { %p602_p9 = pnand %p600_p8, %p597_p7 }
 0x11e   :  { %605 = shalt.err (!%p602_p9)
}
 0x11f   :  { %463 = dma.vmem_to_hbm [thread:$0]  %s461_s12, 16, %s830_s4, [#allocation7]  }
 0x120   :  { %s520_s25 = spop %519  ;;  %s606_s26 = scalar_lea.vmem %s471_s15, 16 }
 0x121   :  { %v409_v54 = vstv %s520_s25  ;;  %p607_p10 = scmp.ne.s32.totalorder %s471_s15, %s606_s26  ;;  %s610_s27 = scalar_lea.vmem %s471_s15, 32 }
 0x122   :  { %410 = vst.msk [vmem:[#allocation11] sm:$0x1] %vm366_vm7, %v409_v54  ;;  %p611_p11 = scmp.lt.s32.totalorder %s471_s15, %s471_s15  ;;  %p612_p12 = scmp.lt.s32.totalorder %s610_s27, %s606_s26 }
 0x124   :  { %p613_p13 = por %p612_p12, %p611_p11 }
 0x126   :  { %p614_p0 = pnand %p613_p13, %p607_p10 }
 0x128   :  { %617 = shalt.err (!%p614_p0)
}
 0x129   :  { %s618_s30 = scalar_lea.hbm %s831_s5, 16 }
 0x12a   :  { %p619_p1 = scmp.ne.s32.totalorder %s831_s5, %s618_s30  ;;  %p622_p2 = scmp.lt.u32.totalorder %s618_s30, %s831_s5 }
 0x12c   :  { %p624_p3 = pnand %p622_p2, %p619_p1 }
 0x12e   :  { %627 = shalt.err (!%p624_p3)
}
 0x12f   :  { %473 = dma.vmem_to_hbm [thread:$0]  %s471_s15, 16, %s831_s5, [#allocation12]  }
 0x130   :  { %s666_s11 = smov [#allocation13]  }
 0x131   :  { %s480_s3 = sshll.u32 %s666_s11, 4  ;;  %s522_s12 = spop %521  ;;  %s481_s3 = int_to_ptr.vmem [resolvable:$true] %s480_s3 }
 0x132   :  { %v452_v55 = vstv %s522_s12  ;;  %s628_s13 = scalar_lea.vmem %s481_s3, 16  ;;  %s632_s14 = scalar_lea.vmem %s481_s3, 32 }
 0x133   :  { %453 = vst.msk [vmem:[#allocation13] sm:$0x1] %vm366_vm7, %v452_v55  ;;  %p629_p4 = scmp.ne.s32.totalorder %s481_s3, %s628_s13  ;;  %p633_p5 = scmp.lt.s32.totalorder %s481_s3, %s481_s3 }
 0x134   :  { %p634_p6 = scmp.lt.s32.totalorder %s632_s14, %s628_s13 }
 0x136   :  { %p635_p7 = por %p634_p6, %p633_p5 }
 0x138   :  { %p636_p8 = pnand %p635_p7, %p629_p4 }
 0x13a   :  { %639 = shalt.err (!%p636_p8)
}
 0x13b   :  { %s640_s18 = scalar_lea.hbm %s832_s6, 16 }
 0x13c   :  { %p641_p9 = scmp.ne.s32.totalorder %s832_s6, %s640_s18  ;;  %p644_p10 = scmp.lt.u32.totalorder %s640_s18, %s832_s6 }
 0x13e   :  { %p646_p11 = pnand %p644_p10, %p641_p9 }
 0x140   :  { %649 = shalt.err (!%p646_p11)
}
 0x141   :  { %483 = dma.vmem_to_hbm [thread:$0]  %s481_s3, 16, %s832_s6, [#allocation12]  }
 0x142   :  { %654 = dma.done.wait [#allocation7], 16  }
 0x143   :  { %655 = vsyncadd [#allocation7], 4294967280 }
 0x144   :  { %656 = dma.done.wait [#allocation12], 32  }
 0x145   :  { %657 = vsyncadd [#allocation12], 4294967264 }
 0x146   :  { %493 = vsyncpa [#allocation6], 1 }
 0x147   :  { %494 = vsyncpa [#allocation9], 1 }
 0x148   :  { %495 = vsyncpa [#allocation7], 1 }
 0x149   :  { %496 = vsyncpa [#allocation12], 1 }

</bundles_post_ra>
